<compile_context>
chip_gen: v7x
topology: tpu7x:2x2x1
jax: 0.10.0
libtpu: 0.0.40
codegen_flags: <defaults>
</compile_context>

<pallas_src>
import functools

import jax
import jax.numpy as jnp
import numpy as np
from jax.experimental import pallas as pl
from jax.experimental.pallas import tpu as pltpu

EPS = 1e-6
_MiB = 1024 * 1024


def _round_up(a: int, m: int) -> int:
    return (a + m - 1) // m * m


def _vmem_policy():
    """Returns (vmem_budget_bytes for tile sizing, vmem_limit cap, num TCs)."""
    cap = 0
    cores = 1
    try:
        info = pltpu.get_tpu_info()
        cap = int(getattr(info, "vmem_capacity_bytes", 0) or 0)
        for name in ("num_cores", "tensorcores_per_chip", "core_count"):
            v = getattr(info, name, None)
            if isinstance(v, int) and v > 0:
                cores = v
                break
    except Exception:
        pass
    if cap >= 100 * _MiB:                      # v5e / v6e: 128 MiB physical per TC
        return 72 * _MiB, 100 * _MiB, cores
    # v7x-class (64 MiB per TC) or unknown: conservative budget, assume 2 TCs.
    return 40 * _MiB, 52 * _MiB, max(cores, 2)


def _ln_epilogue(y, g_ref, beta_ref, mask_ref, *, d_real, eps, use_mask):
    """Channel LayerNorm over the real D channels of y (f32, (tm, D_pad))."""
    inv_d = 1.0 / float(d_real)
    # Padded channels of y are exactly 0 (zero-padded W/b), so the plain sum
    # equals the sum over real channels.
    u = jnp.sum(y, axis=-1, keepdims=True) * inv_d
    d = y - u
    dm = d * mask_ref[...] if use_mask else d      # exclude padded lanes from var
    s = jnp.sum(dm * dm, axis=-1, keepdims=True) * inv_d
    yn = d * jax.lax.rsqrt(s + eps)
    return g_ref[...].astype(jnp.float32) * yn + beta_ref[...].astype(jnp.float32)


def _kernel_single_k(x_ref, w_ref, b_ref, g_ref, beta_ref, mask_ref, o_ref, *,
                     d_real, eps, use_mask):
    """Fast path: whole F contraction in one MXU call; no f32 scratch RMW."""
    y = jnp.dot(x_ref[...], w_ref[...], preferred_element_type=jnp.float32)
    y = y + b_ref[...].astype(jnp.float32)
    out = _ln_epilogue(y, g_ref, beta_ref, mask_ref,
                       d_real=d_real, eps=eps, use_mask=use_mask)
    o_ref[...] = out.astype(o_ref.dtype)


def _kernel_multi_k(x_ref, w_ref, b_ref, g_ref, beta_ref, mask_ref, o_ref,
                    acc_ref, *, d_real, eps, use_mask):
    """K-tiled fallback for very large F: f32 accumulator + LN epilogue."""
    k = pl.program_id(1)

    @pl.when(k == 0)
    def _():
        acc_ref[...] = jnp.zeros_like(acc_ref)

    acc_ref[...] += jnp.dot(x_ref[...], w_ref[...],
                            preferred_element_type=jnp.float32)

    @pl.when(k == pl.num_programs(1) - 1)
    def _():
        y = acc_ref[...] + b_ref[...].astype(jnp.float32)
        out = _ln_epilogue(y, g_ref, beta_ref, mask_ref,
                           d_real=d_real, eps=eps, use_mask=use_mask)
        o_ref[...] = out.astype(o_ref.dtype)


def patch_embed_and_mlp(x, proj_w, proj_b, ln_w, ln_b, *, patch_size,
                        tm=512, tk_max=512, eps=EPS, channels_last=False,
                        token_buffers=2):
    """x: (B, C, H, W). proj_w: (D, F) with F = C*p*p. Returns (B, D, nH, nW)
    (or (B, nH, nW, D) if channels_last=True, skipping one HBM transpose)."""
    B, C, H, W = x.shape
    p = patch_size
    nH, nW = H // p, W // p
    F = C * p * p
    D = proj_w.shape[0]
    D_pad = _round_up(D, 128)            # lane-dense output / full-vreg LN reduce

    vmem_budget, vmem_cap, num_cores = _vmem_policy()

    # --- patchify exactly like the PyTorch view/permute (one materialization;
    # the F pad below fuses into the same copy). allow_input_fusion lets XLA
    # fold it into the pallas_call input when it can.
    xt = x.reshape(B, C, nH, p, nW, p)
    xt = jnp.transpose(xt, (0, 2, 4, 1, 3, 5))          # (B, nH, nW, C, p, p)
    tokens = xt.reshape(B * nH * nW, F)                 # (N, F)
    N = tokens.shape[0]

    F_pad = _round_up(F, 128)                           # full-lane MXU contraction
    if F_pad != F:
        tokens = jnp.pad(tokens, ((0, 0), (0, F_pad - F)))

    itm_x = tokens.dtype.itemsize
    itm_w = x.dtype.itemsize                            # weight cast to x.dtype below
    itm_o = x.dtype.itemsize
    w_bytes_full = F_pad * D_pad * itm_w

    # --- K tiling: only when the whole (F_pad, D_pad) weight can't stay resident.
    single_k = 2 * w_bytes_full <= vmem_budget // 2
    if single_k:
        tk = F_pad
        num_k = 1
    else:
        tk = 128
        for cand in range(min(tk_max, F_pad), 127, -128):
            if F_pad % cand == 0:                       # divisor of F_pad -> no K pad
                tk = cand
                break
        num_k = F_pad // tk

    bufs = max(2, int(token_buffers))

    def working_set(m):
        if single_k:
            return (bufs * m * F_pad * itm_x            # token tiles
                    + 2 * w_bytes_full                  # resident weight (+ spare buf)
                    + 2 * m * D_pad * itm_o             # output tiles
                    + 8 * D_pad * 4)                    # bias/gamma/beta/mask
        return (bufs * m * tk * itm_x + 2 * tk * D_pad * itm_w
                + 2 * m * D_pad * itm_o + m * D_pad * 4 + 8 * D_pad * 4)

    sub = {1: 32, 2: 16}.get(itm_x, 8)                  # sublane packing per dtype
    tm_eff = min(_round_up(tm, sub), _round_up(N, sub))
    while tm_eff > 8 * sub and working_set(tm_eff) > vmem_budget:
        tm_eff = max(8 * sub, _round_up(tm_eff // 2, sub))
    # Megacore: keep >= num_cores balanced i-tiles so no TensorCore idles (v7x).
    if num_cores > 1:
        while pl.cdiv(N, tm_eff) < num_cores and tm_eff > sub:
            tm_eff = max(sub, _round_up(pl.cdiv(tm_eff, 2), sub))

    num_i = pl.cdiv(N, tm_eff)                          # ragged last block, no N pad

    # --- parameters: transpose weight, cast to activation dtype, zero-pad D/F ---
    w_t = proj_w.T.astype(x.dtype)                                   # (F, D)
    w_t = jnp.pad(w_t, ((0, F_pad - F), (0, D_pad - D)))
    b_2d = jnp.pad(proj_b.astype(jnp.float32), (0, D_pad - D)).reshape(1, D_pad)
    g_2d = jnp.pad(ln_w.astype(jnp.float32), (0, D_pad - D)).reshape(1, D_pad)
    beta_2d = jnp.pad(ln_b.astype(jnp.float32), (0, D_pad - D)).reshape(1, D_pad)
    use_mask = D_pad != D
    mask_2d = (jnp.arange(D_pad) < D).astype(jnp.float32).reshape(1, D_pad)

    vmem_limit = min(vmem_cap, max(32 * _MiB, int(working_set(tm_eff)) * 3 // 2))

    def tok_spec(idx_map):
        if bufs > 2:
            return pl.BlockSpec((tm_eff, tk), idx_map, pipeline_mode=pl.Buffered(bufs))
        return pl.BlockSpec((tm_eff, tk), idx_map)

    kernel_kwargs = dict(d_real=D, eps=eps, use_mask=use_mask)
    compiler_params = pltpu.CompilerParams(
        dimension_semantics=("parallel",) if single_k else ("parallel", "arbitrary"),
        vmem_limit_bytes=vmem_limit,
        allow_input_fusion=[True, False, False, False, False, False],
    )
    cost = pl.CostEstimate(
        flops=2 * N * F_pad * D_pad,
        transcendentals=0,
        bytes_accessed=(N * F_pad * itm_x
                        + w_bytes_full * (1 if single_k else num_i)
                        + N * D_pad * itm_o
                        + 4 * D_pad * 4),
    )

    if single_k:
        grid_spec = pltpu.PrefetchScalarGridSpec(
            num_scalar_prefetch=0,
            grid=(num_i,),
            in_specs=[
                tok_spec(lambda i: (i, 0)),                          # token tile
                pl.BlockSpec((F_pad, D_pad), lambda i: (0, 0)),      # resident weight
                pl.BlockSpec((1, D_pad), lambda i: (0, 0)),          # proj bias
                pl.BlockSpec((1, D_pad), lambda i: (0, 0)),          # LN gamma
                pl.BlockSpec((1, D_pad), lambda i: (0, 0)),          # LN beta
                pl.BlockSpec((1, D_pad), lambda i: (0, 0)),          # lane mask
            ],
            out_specs=pl.BlockSpec((tm_eff, D_pad), lambda i: (i, 0)),
        )
        kernel = functools.partial(_kernel_single_k, **kernel_kwargs)
    else:
        grid_spec = pltpu.PrefetchScalarGridSpec(
            num_scalar_prefetch=0,
            grid=(num_i, num_k),
            in_specs=[
                tok_spec(lambda i, k: (i, k)),
                pl.BlockSpec((tk, D_pad), lambda i, k: (k, 0)),
                pl.BlockSpec((1, D_pad), lambda i, k: (0, 0)),
                pl.BlockSpec((1, D_pad), lambda i, k: (0, 0)),
                pl.BlockSpec((1, D_pad), lambda i, k: (0, 0)),
                pl.BlockSpec((1, D_pad), lambda i, k: (0, 0)),
            ],
            out_specs=pl.BlockSpec((tm_eff, D_pad), lambda i, k: (i, 0)),
            scratch_shapes=[pltpu.VMEM((tm_eff, D_pad), jnp.float32)],
        )
        kernel = functools.partial(_kernel_multi_k, **kernel_kwargs)

    out = pl.pallas_call(
        kernel,
        out_shape=jax.ShapeDtypeStruct((N, D_pad), x.dtype),
        grid_spec=grid_spec,
        compiler_params=compiler_params,
        cost_estimate=cost,
    )(tokens, w_t, b_2d, g_2d, beta_2d, mask_2d)

    # Drop D padding (only when padded) and restore the module's output layout.
    # TODO(synk): for very small D the padded-lane output write + slice cost a
    # measurable fraction of the kernel; masked stores would avoid it.
    if use_mask:
        out = out[:, :D]
    out = out.reshape(B, nH, nW, D)
    if channels_last:
        return out                                  # NHWC: skips one HBM pass
    return jnp.transpose(out, (0, 3, 1, 2))         # NCHW like the module


def _reference(x, proj_w, proj_b, ln_w, ln_b, patch_size):
    B, C, H, W = x.shape
    p = patch_size
    nH, nW = H // p, W // p
    xt = x.reshape(B, C, nH, p, nW, p)
    xt = jnp.transpose(xt, (0, 2, 4, 1, 3, 5)).reshape(B * nH * nW, C * p * p)
    y = xt @ proj_w.T + proj_b
    u = jnp.mean(y, axis=-1, keepdims=True)
    s = jnp.mean((y - u) ** 2, axis=-1, keepdims=True)
    yn = (y - u) / jnp.sqrt(s + EPS)
    y = ln_w * yn + ln_b
    y = y.reshape(B, nH, nW, -1)
    return jnp.transpose(y, (0, 3, 1, 2))


if __name__ == "__main__":
    # Small shapes consistent with the module.
    B, C, H, W = 2, 4, 16, 16
    patch_size = 4
    mlp_hidden = 32                  # mlp_hidden_features (output channels D)
    F = C * patch_size * patch_size  # in_features = C * p * p = 64

    key = jax.random.PRNGKey(0)
    kx, kw, kb = jax.random.split(key, 3)

    x = jax.random.normal(kx, (B, C, H, W), dtype=jnp.float32)

    # Deterministic parameter init (Conv2d-like proj; LayerNorm weight=1, bias=0).
    proj_w = 0.02 * jax.random.normal(kw, (mlp_hidden, F), dtype=jnp.float32)
    proj_b = 0.01 * jax.random.normal(kb, (mlp_hidden,), dtype=jnp.float32)
    ln_w = jnp.ones((mlp_hidden,), dtype=jnp.float32)
    ln_b = jnp.zeros((mlp_hidden,), dtype=jnp.float32)

    fn = jax.jit(functools.partial(patch_embed_and_mlp, patch_size=patch_size))
    out = jax.block_until_ready(fn(x, proj_w, proj_b, ln_w, ln_b))

    ref = _reference(x, proj_w, proj_b, ln_w, ln_b, patch_size)
    assert out.shape == (B, mlp_hidden, H // patch_size, W // patch_size), out.shape
    np.testing.assert_allclose(np.asarray(out), np.asarray(ref), rtol=1e-4, atol=1e-4)

    print("KERNEL_OK")
</pallas_src>

<mosaic_0001>
module attributes {stable_mosaic.version = 11 : i64} {
  func.func @_kernel_single_k(%arg0: i32, %arg1: memref<16x128xf32, #tpu.memory_space<vmem>>, %arg2: memref<128x128xf32, #tpu.memory_space<vmem>>, %arg3: memref<1x128xf32, #tpu.memory_space<vmem>>, %arg4: memref<1x128xf32, #tpu.memory_space<vmem>>, %arg5: memref<1x128xf32, #tpu.memory_space<vmem>>, %arg6: memref<1x128xf32, #tpu.memory_space<vmem>>, %arg7: memref<16x128xf32, #tpu.memory_space<vmem>>) attributes {dimension_semantics = [#tpu.dimension_semantics<parallel>], iteration_bounds = array<i64: 2>, scalar_prefetch = 0 : i64, scratch_operands = 0 : i64, tpu.core_type = #tpu.core_type<tc>, window_params = [{transform_indices = @transform_0, window_bounds = array<i64: 16, 128>}, {pipeline_mode = #tpu.pipeline_mode<synchronous>, transform_indices = @transform_1, window_bounds = array<i64: 128, 128>}, {pipeline_mode = #tpu.pipeline_mode<synchronous>, transform_indices = @transform_2, window_bounds = array<i64: 1, 128>}, {pipeline_mode = #tpu.pipeline_mode<synchronous>, transform_indices = @transform_3, window_bounds = array<i64: 1, 128>}, {pipeline_mode = #tpu.pipeline_mode<synchronous>, transform_indices = @transform_4, window_bounds = array<i64: 1, 128>}, {pipeline_mode = #tpu.pipeline_mode<synchronous>, transform_indices = @transform_5, window_bounds = array<i64: 1, 128>}, {transform_indices = @transform_6, window_bounds = array<i64: 16, 128>}]} {
    %c0 = arith.constant 0 : index
    %c0_0 = arith.constant 0 : index
    %0 = vector.load %arg1[%c0, %c0_0] : memref<16x128xf32, #tpu.memory_space<vmem>>, vector<16x128xf32>
    %c0_1 = arith.constant 0 : index
    %c0_2 = arith.constant 0 : index
    %1 = vector.load %arg2[%c0_1, %c0_2] : memref<128x128xf32, #tpu.memory_space<vmem>>, vector<128x128xf32>
    %cst = arith.constant dense<0.000000e+00> : vector<16x128xf32>
    %2 = tpu.matmul %0, %1, %cst {dimension_numbers = #tpu.dot_dimension_numbers<[1], [0], [0], [1], [0, 0, 1, 1], [], []>} : vector<16x128xf32>, vector<128x128xf32>, vector<16x128xf32> -> vector<16x128xf32>
    %c0_3 = arith.constant 0 : index
    %c0_4 = arith.constant 0 : index
    %3 = vector.load %arg3[%c0_3, %c0_4] : memref<1x128xf32, #tpu.memory_space<vmem>>, vector<1x128xf32>
    %4 = vector.broadcast %3 : vector<1x128xf32> to vector<16x128xf32>
    %5 = arith.addf %2, %4 : vector<16x128xf32>
    %cst_5 = arith.constant dense<0.000000e+00> : vector<16xf32>
    %6 = vector.multi_reduction <add>, %5, %cst_5 [1] : vector<16x128xf32> to vector<16xf32>
    %7 = vector.shape_cast %6 : vector<16xf32> to vector<16x1xf32>
    %cst_6 = arith.constant 3.125000e-02 : f32
    %8 = vector.broadcast %cst_6 : f32 to vector<16x1xf32>
    %9 = arith.mulf %7, %8 : vector<16x1xf32>
    %10 = vector.broadcast %9 : vector<16x1xf32> to vector<16x128xf32>
    %11 = arith.subf %5, %10 : vector<16x128xf32>
    %c0_7 = arith.constant 0 : index
    %c0_8 = arith.constant 0 : index
    %12 = vector.load %arg6[%c0_7, %c0_8] : memref<1x128xf32, #tpu.memory_space<vmem>>, vector<1x128xf32>
    %13 = vector.broadcast %12 : vector<1x128xf32> to vector<16x128xf32>
    %14 = arith.mulf %11, %13 : vector<16x128xf32>
    %15 = arith.mulf %14, %14 : vector<16x128xf32>
    %cst_9 = arith.constant dense<0.000000e+00> : vector<16xf32>
    %16 = vector.multi_reduction <add>, %15, %cst_9 [1] : vector<16x128xf32> to vector<16xf32>
    %17 = vector.shape_cast %16 : vector<16xf32> to vector<16x1xf32>
    %cst_10 = arith.constant 3.125000e-02 : f32
    %18 = vector.broadcast %cst_10 : f32 to vector<16x1xf32>
    %19 = arith.mulf %17, %18 : vector<16x1xf32>
    %cst_11 = arith.constant 9.99999997E-7 : f32
    %20 = vector.broadcast %cst_11 : f32 to vector<16x1xf32>
    %21 = arith.addf %19, %20 : vector<16x1xf32>
    %22 = math.rsqrt %21 : vector<16x1xf32>
    %23 = vector.broadcast %22 : vector<16x1xf32> to vector<16x128xf32>
    %24 = arith.mulf %11, %23 : vector<16x128xf32>
    %c0_12 = arith.constant 0 : index
    %c0_13 = arith.constant 0 : index
    %25 = vector.load %arg4[%c0_12, %c0_13] : memref<1x128xf32, #tpu.memory_space<vmem>>, vector<1x128xf32>
    %26 = vector.broadcast %25 : vector<1x128xf32> to vector<16x128xf32>
    %27 = arith.mulf %26, %24 : vector<16x128xf32>
    %c0_14 = arith.constant 0 : index
    %c0_15 = arith.constant 0 : index
    %28 = vector.load %arg5[%c0_14, %c0_15] : memref<1x128xf32, #tpu.memory_space<vmem>>, vector<1x128xf32>
    %29 = vector.broadcast %28 : vector<1x128xf32> to vector<16x128xf32>
    %30 = arith.addf %27, %29 : vector<16x128xf32>
    %c0_16 = arith.constant 0 : index
    %c0_17 = arith.constant 0 : index
    %31 = vector.load %arg7[%c0_16, %c0_17] : memref<16x128xf32, #tpu.memory_space<vmem>>, vector<16x128xf32>
    tpu.vector_store %arg7[%c0_16, %c0_17], %30 {strides = array<i32>} : memref<16x128xf32, #tpu.memory_space<vmem>>, vector<16x128xf32>,
    return
  }
  func.func @transform_0(%arg0: i32) -> (i32, i32) {
    %c0_i32 = arith.constant 0 : i32
    %c0_i32_0 = arith.constant 0 : i32
    return %arg0, %c0_i32 : i32, i32
  }
  func.func @transform_1(%arg0: i32) -> (i32, i32) {
    %c0_i32 = arith.constant 0 : i32
    %c0_i32_0 = arith.constant 0 : i32
    %c0_i32_1 = arith.constant 0 : i32
    return %c0_i32, %c0_i32_0 : i32, i32
  }
  func.func @transform_2(%arg0: i32) -> (i32, i32) {
    %c0_i32 = arith.constant 0 : i32
    %c0_i32_0 = arith.constant 0 : i32
    %c0_i32_1 = arith.constant 0 : i32
    return %c0_i32, %c0_i32_0 : i32, i32
  }
  func.func @transform_3(%arg0: i32) -> (i32, i32) {
    %c0_i32 = arith.constant 0 : i32
    %c0_i32_0 = arith.constant 0 : i32
    %c0_i32_1 = arith.constant 0 : i32
    return %c0_i32, %c0_i32_0 : i32, i32
  }
  func.func @transform_4(%arg0: i32) -> (i32, i32) {
    %c0_i32 = arith.constant 0 : i32
    %c0_i32_0 = arith.constant 0 : i32
    %c0_i32_1 = arith.constant 0 : i32
    return %c0_i32, %c0_i32_0 : i32, i32
  }
  func.func @transform_5(%arg0: i32) -> (i32, i32) {
    %c0_i32 = arith.constant 0 : i32
    %c0_i32_0 = arith.constant 0 : i32
    %c0_i32_1 = arith.constant 0 : i32
    return %c0_i32, %c0_i32_0 : i32, i32
  }
  func.func @transform_6(%arg0: i32) -> (i32, i32) {
    %c0_i32 = arith.constant 0 : i32
    %c0_i32_0 = arith.constant 0 : i32
    return %arg0, %c0_i32 : i32, i32
  }
}

</mosaic_0001>

<bundles_post_ra>
// kernel: patch_embed_and_mlp.2
= control target key start
LH: loop header
LB: loop body
LE: loop exit
PB: predicated region body
PF: predicated region fallthrough
CT: control target
= control target key end

     0   :  { %s930_s0 = inlined_call_operand.vmem [shape: f32[128,128], index: 0, kind: input, shape index: {}]   ;;  %s931_s1 = inlined_call_operand.vmem [shape: f32[1,128], index: 1, kind: input, shape index: {}]   ;;  %s932_s2 = inlined_call_operand.vmem [shape: f32[1,128], index: 2, kind: input, shape index: {}]   ;;  %s933_s3 = inlined_call_operand.vmem [shape: f32[1,128], index: 3, kind: input, shape index: {}]   ;;  %s934_s4 = inlined_call_operand.vmem [shape: f32[1,128], index: 4, kind: input, shape index: {}]   ;;  %s935_s5 = inlined_call_operand.vmem [shape: f32[32,64], index: 5, kind: input, shape index: {}]   ;;  %s936_s6 = inlined_call_operand.<no memory space> [shape: f32[], index: 6, kind: input, shape index: {}]   ;;  %s937_s7 = inlined_call_operand.hbm [shape: f32[32,128], index: 7, kind: output, shape index: {}]  }
   0x1   :  { %v12_v0 = vstv %s936_s6 }
   0x2   :  { %13 = vsyncpa [#allocation8], 0 }
   0x3   :  { %15 = vsyncpa [#allocation8 + $0x1], 0  ;;  %s758_s26 = smov 0   ;;  %s760_s27 = smov 0  }
   0x4   :  { %s762_s28 = smov 0   ;;  %s764_s29 = smov 0  }
   0x5 LB: > { %s779_s30 = sadd.s32 4294967295, %s710_s29   ;;  %s500_s8 = sadd.s32 4294967294, %s710_s29   ;;  %s710_s29 = sphi %s764_s29, %s943_s29   ;;  %s706_s28 = sphi %s762_s28, %s942_s28   ;;  %s702_s27 = sphi %s760_s27, %s941_s27   ;;  %s698_s26 = sphi %s758_s26, %s940_s26  }
   0x6   : > { %s783_s9 = sadd.s32 1, %s710_s29   ;;  %s159_s10 = sadd.s32 1, %s706_s28 }
   0x7   : > { %s156_s11 = ssub.s32 %s710_s29, %s783_s9  ;;  %p169_p0 = scmp.ne.s32.totalorder %s706_s28, %s702_s27 }
   0x8   : > { %p157_p1 = scmp.eq.s32.totalorder %s156_s11, 0  ;;  %p170_p2 = scmp.eq.s32.totalorder %s779_s30, 1 }
   0x9   : > { %p175_p3 = scmp.ne.s32.totalorder %s702_s27, %s698_s26  ;;  %p176_p4 = scmp.eq.s32.totalorder %s500_s8, 1 }
   0xa   : > { %s794_s12 = scalar_select %p157_p1, %s706_s28, %s159_s10  }
   0xb   : > { %p796_p5 = por %p170_p2, %p169_p0  ;;  %p800_p6 = por %p176_p4, %p175_p3 }
   0xc   : > { %p503_p7 = scmp.ge.s32.totalorder %s710_s29, 1  ;;  %p218_p8 = scmp.lt.s32.totalorder %s710_s29, 3 }
   0xe   : > { %p219_p9 = pnand %p503_p7, %p218_p8 }
   0xf   : > { %v275_v1 = vld [vmem:[%s930_s0] sm:$0xff] (!%p219_p9)  ;;  %v276_v2 = vld [vmem:[%s930_s0 + $0x8] sm:$0xff] (!%p219_p9)  ;;  %v277_v3 = vld [vmem:[%s930_s0 + $0x10] sm:$0xff] (!%p219_p9)  ;;  %s505_s21 = sshll.u32 (!%p219_p9), %s779_s30, 1  ;;  %v256_v4 = vlaneseq (!%p219_p9)  ;;  %s245_s18 = sand.u32 (!%p219_p9), 1, %s702_s27  }
  0x10   : > { %222 = sbr.rel (%p219_p9) target bundleno = 597 (0x255), region = 44  ;;  %v571_v5 = vpack.c.bf16 (!%p219_p9), %v276_v2, %v275_v1  ;;  %v278_v6 = vld [vmem:[%s930_s0 + $0x18] sm:$0xff] (!%p219_p9)  ;;  %p249_p10 = scmp.lt.s32.totalorder (!%p219_p9), %s505_s21, 3  ;;  %v279_v8 = vld [vmem:[%s930_s0 + $0x20] sm:$0xff] (!%p219_p9)  ;;  %v280_v9 = vld [vmem:[%s930_s0 + $0x28] sm:$0xff] (!%p219_p9) }
  0x11   : > { %v575_v7 = vpack.c.bf16 (!%p219_p9), %v278_v6, %v277_v3  ;;  %v257_v10 = vand.u32 (!%p219_p9), 127, %v256_v4  ;;  %v579_v11 = vpack.c.bf16 (!%p219_p9), %v280_v9, %v279_v8  ;;  %v281_v12 = vld [vmem:[%s930_s0 + $0x30] sm:$0xff] (!%p219_p9)  ;;  %v282_v13 = vld [vmem:[%s930_s0 + $0x38] sm:$0xff] (!%p219_p9)  ;;  %v283_v17 = vld [vmem:[%s930_s0 + $0x40] sm:$0xff] (!%p219_p9)  ;;  %s504_s23 = sshll.u32 (!%p219_p9), %s245_s18, 4  ;;  %s517_s25 = sshll.u32 (!%p219_p9), %s779_s30, 8 }
  0x12   : > { %572 = vmatprep.subr.bf16.mxu0 (!%p219_p9), %v571_v5  ;;  %v583_v16 = vpack.c.bf16 (!%p219_p9), %v282_v13, %v281_v12  ;;  %v284_v18 = vld [vmem:[%s930_s0 + $0x48] sm:$0xff] (!%p219_p9)  ;;  %v285_v20 = vld [vmem:[%s930_s0 + $0x50] sm:$0xff] (!%p219_p9)  ;;  %v286_v21 = vld [vmem:[%s930_s0 + $0x58] sm:$0xff] (!%p219_p9)  ;;  %s247_s8 = scalar_lea.vmem (!%p219_p9), [#allocation7], %s504_s23  ;;  %s885_s16 = scalar_lea.hbm (!%p219_p9), %s937_s7, %s517_s25 }
  0x13   : > { %574 = vmatpush3.bf16.msra.mxu0 (!%p219_p9), %v571_v5  ;;  %vm259_vm0 = vcmp.lt.s32.totalorder (!%p219_p9), %v257_v10, 64  ;;  %v587_v19 = vpack.c.bf16 (!%p219_p9), %v284_v18, %v283_v17  ;;  %v591_v22 = vpack.c.bf16 (!%p219_p9), %v286_v21, %v285_v20  ;;  %v287_v23 = vld [vmem:[%s930_s0 + $0x60] sm:$0xff] (!%p219_p9)  ;;  %v288_v24 = vld [vmem:[%s930_s0 + $0x68] sm:$0xff] (!%p219_p9)  ;;  %v289_v26 = vld [vmem:[%s930_s0 + $0x70] sm:$0xff] (!%p219_p9)  ;;  %s438_s10 = sshll.u32 (!%p219_p9), %s247_s8, 4  ;;  %s712_s30 = smov (!%p219_p9), [#allocation7]   ;;  %s887_s10 = int_to_ptr.vmem [resolvable:$true] %s438_s10 }
  0x14   : > { %576 = vmatprep.subr.bf16.mxu0 (!%p219_p9), %v575_v7  ;;  %v595_v25 = vpack.c.bf16 (!%p219_p9), %v288_v24, %v287_v23  ;;  %v290_v27 = vld [vmem:[%s930_s0 + $0x78] sm:$0xff] (!%p219_p9)  ;;  %v508_v31 = vld [vmem:[%s931_s1] ss:$0 sm:$0xff] (!%p219_p9)  ;;  %s648_s17 = scalar_lea.vmem (!%p219_p9), %s887_s10, 256  ;;  %s652_s19 = sshll.u32 (!%p219_p9), %s712_s30, 4  ;;  %s653_s19 = int_to_ptr.vmem [resolvable:$false] %s652_s19 }
  0x15   : > { %v599_v28 = vpack.c.bf16 (!%p219_p9), %v290_v27, %v289_v26  ;;  %v509_v38 = vld [vmem:[%s934_s4] ss:$0 sm:$0xff] (!%p219_p9)  ;;  %p649_p11 = scmp.ne.s32.totalorder (!%p219_p9), %s887_s10, %s648_s17  ;;  %s654_s20 = scalar_lea.vmem (!%p219_p9), %s653_s19, 512 }
  0x16   : > { %v510_v54 = vld [vmem:[%s932_s2] ss:$0 sm:$0xff] (!%p219_p9)  ;;  %p655_p0 = scmp.lt.s32.totalorder (!%p219_p9), %s887_s10, %s653_s19  ;;  %p656_p1 = scmp.lt.s32.totalorder (!%p219_p9), %s654_s20, %s648_s17 }
  0x17   : > { %s945_s21 = smov (!%p249_p10, %s505_s21), 3  ;;  %578 = vmatpush3.bf16.msra.mxu0 %v575_v7  ;;  %v511_v56 = vld [vmem:[%s933_s3] ss:$0 sm:$0xff]  ;;  %p650_p12 = pnand %p649_p11, %p796_p5 }
  0x18   : > { %s506_s11 = sshll.u32 %s945_s21, 3  ;;  %580 = vmatprep.subr.bf16.mxu0 %v579_v11  ;;  %p657_p2 = por %p656_p1, %p655_p0 }
  0x19   : > { %s252_s22 = scalar_lea.vmem %s935_s5, %s506_s11  ;;  %p651_p13 = pneg %p650_p12 }
  0x1a   : > { %v255_v14 = vld [vmem:[%s252_s22] sm:$0xff]  ;;  %v507_v29 = vld [vmem:[%s252_s22 + $0x8] sm:$0xff]  ;;  %s889_s22 = scalar_lea.sflag [#allocation8], %s245_s18 }
  0x1b   : > { %v260_v15 = vsel %vm259_vm0, %v255_v14, %v12_v0  ;;  %582 = vmatpush3.bf16.msra.mxu0 %v579_v11  ;;  %v269_v30 = vsel %vm259_vm0, %v507_v29, %v12_v0  ;;  %p658_p3 = pnand %p657_p2, %p651_p13 }
  0x1c   : > { %568 = vmatprep.mubr.f32.mxu0 %v260_v15  ;;  %584 = vmatprep.subr.bf16.mxu0 %v583_v16 }
  0x1f   : > { %586 = vmatpush3.bf16.msra.mxu0 %v583_v16 }
  0x20   : > { %588 = vmatprep.subr.bf16.mxu0 %v587_v19 }
  0x23   : > { %590 = vmatpush3.bf16.msra.mxu0 %v587_v19 }
  0x24   : > { %592 = vmatprep.subr.bf16.mxu0 %v591_v22 }
  0x27   : > { %594 = vmatpush3.bf16.msra.mxu0 %v591_v22 }
  0x28   : > { %596 = vmatprep.subr.bf16.mxu0 %v595_v25 }
  0x2b   : > { %598 = vmatpush3.bf16.msra.mxu0 %v595_v25 }
  0x2c   : > { %600 = vmatprep.subr.bf16.mxu0 %v599_v28 }
  0x2f   : > { %602 = vmatpush3.bf16.msra.mxu0 %v599_v28 }
  0x32   : > { %569 = vmatmul.mubr.f32.vlgmr.msra.gmra.mrb[0].mxu0 %v269_v30 }
 0x105   : > { %v570_v32 = vpop.f32.mrb[0].mxu0 }
 0x106   : > { %v364_v33 = vpop.f32.mrb[1].mxu0  ;;  %v370_v35 = vadd.f32 %v570_v32, %v508_v31 }
 0x107   : > { %v365_v34 = vadd.f32 %v508_v31, %v364_v33 }
 0x109   : > { %373 = vadd.xlane.f32.xlu0 %v365_v34 }
 0x10d   : > { %375 = vadd.xlane.f32.xlu0 %v370_v35 }
 0x196   : > { %v374_v36 = vpop.xlane.xlu0 %373 }
 0x197   : > { %v377_v37 = vmul.f32 0.03125, %v374_v36 }
 0x199   : > { %v379_v39 = vsub.f32 %v365_v34, %v377_v37 }
 0x19a   : > { %v376_v40 = vpop.xlane.xlu0 %375 }
 0x19b   : > { %v378_v41 = vmul.f32 0.03125, %v376_v40  ;;  %v388_v42 = vmul.f32 %v509_v38, %v379_v39 }
 0x19d   : > { %v380_v43 = vsub.f32 %v370_v35, %v378_v41  ;;  %v390_v44 = vmul.f32 %v388_v42, %v388_v42 }
 0x19f   : > { %392 = vadd.xlane.f32.xlu1 %v390_v44  ;;  %v389_v45 = vmul.f32 %v509_v38, %v380_v43 }
 0x1a1   : > { %v391_v46 = vmul.f32 %v389_v45, %v389_v45 }
 0x1a3   : > { %394 = vadd.xlane.f32.xlu1 %v391_v46 }
 0x22c   : > { %v393_v47 = vpop.xlane.xlu1 %392 }
 0x22d   : > { %v396_v48 = vmul.f32 0.03125, %v393_v47 }
 0x22f   : > { %v398_v49 = vadd.f32 1e-06, %v396_v48 }
 0x230   : > { %v395_v50 = vpop.xlane.xlu1 %394 }
 0x231   : > { %644 = vrsqrt.f32 %v398_v49  ;;  %v397_v51 = vmul.f32 0.03125, %v395_v50 }
 0x233   : > { %v399_v52 = vadd.f32 1e-06, %v397_v51 }
 0x235   : > { %646 = vrsqrt.f32 %v399_v52 }
 0x23b   : > { %v645_v53 = vpop.eup %644 }
 0x23c   : > { %v402_v55 = vmul.f32 %v645_v53, %v379_v39 }
 0x23e   : > { %v411_v57 = vmul.f32 %v510_v54, %v402_v55 }
 0x23f   : > { %v647_v58 = vpop.eup %646 }
 0x240   : > { %v403_v59 = vmul.f32 %v647_v58, %v380_v43  ;;  %v420_v60 = vadd.f32 %v511_v56, %v411_v57 }
 0x242   : > { %v412_v61 = vmul.f32 %v510_v54, %v403_v59  ;;  %422 = vst [vmem:[%s247_s8] sm:$0xff] %v420_v60 }
 0x244   : > { %v421_v62 = vadd.f32 %v511_v56, %v412_v61 }
 0x246   : > { %423 = vst [vmem:[%s247_s8 + $0x8] sm:$0xff] %v421_v62 }
 0x247   : > { %661 = shalt.err (!%p658_p3)
}
 0x248   : > { %s662_s18 = scalar_lea.hbm %s885_s16, 256  ;;  %s666_s21 = scalar_lea.hbm %s937_s7, 512 }
 0x249   : > { %p663_p4 = scmp.ne.s32.totalorder %s885_s16, %s662_s18  ;;  %p667_p9 = scmp.lt.u32.totalorder %s885_s16, %s937_s7 }
 0x24a   : > { %p668_p10 = scmp.lt.u32.totalorder %s666_s21, %s662_s18  ;;  %p670_p12 = scmp.lt.u32.totalorder %s662_s18, %s885_s16 }
 0x24b   : > { %p664_p7 = pnand %p663_p4, %p796_p5 }
 0x24c   : > { %p669_p11 = por %p668_p10, %p667_p9 }
 0x24d   : > { %p665_p8 = pneg %p664_p7 }
 0x24e   : > { %p671_p13 = por %p670_p12, %p669_p11 }
 0x250   : > { %p672_p0 = pnand %p671_p13, %p665_p8 }
 0x252   : > { %675 = shalt.err (!%p672_p0)
}
 0x253   : > { %s713_s11 = smov 128   ;;  %s714_s15 = smov 8  }
 0x254   : > { %603 = dma.vmem_to_hbm [thread:$0]  (%p796_p5), %s887_s10, 256, %s885_s16, %s889_s22, %s713_s11, %s713_s11, %s714_s15  }
 0x255 PF: > { %p609_p1 = scmp.ge.s32.totalorder %s710_s29, 2  ;;  %s453_s17 = sand.u32 1, %s698_s26  }
 0x256   : > { %s454_s30 = scalar_lea.sflag [#allocation8], %s453_s17 }
 0x257   : > { %p606_p2 = pnand %p609_p1, %p800_p6 }
 0x259   : > { %693 = dma.done.wait (!%p606_p2), %s454_s30, 256  }
 0x25a   : > { %695 = vsyncadd (!%p606_p2), %s454_s30, 4294967040  ;;  %p18_p3 = scmp.ge.s32.totalorder %s783_s9, 4   ;;  %s940_s26 = smov %s702_s27 }
 0x25b   : > { %s941_s27 = smov %s706_s28  ;;  %s942_s28 = smov %s794_s12 }
 0x25c   : > { %s943_s29 = smov %s783_s9  ;;  %20 = sbr.rel (!%p18_p3) target bundleno = 5 (0x5), region = 81 }
 0x263   :  { %459 = vsyncpa [#allocation8], 1 }
 0x264   :  { %461 = vsyncpa [#allocation8 + $0x1], 1 }

</bundles_post_ra>
